<compile_context>
chip_gen: v7x
topology: tpu7x:2x2x1
jax: 0.10.0
libtpu: 0.0.40
codegen_flags: <defaults>
</compile_context>

<pallas_src>
import functools

import jax
import jax.numpy as jnp
from jax.experimental import pallas as pl
from jax.experimental.pallas import tpu as pltpu


def decoder_kernel(x_ref, w1_ref, b1_ref, w2_ref, b2_ref, o_ref):
    # fc1 (MXU) + bias + ReLU (VPU), f32 accumulation.
    h = jnp.dot(x_ref[...], w1_ref[...], preferred_element_type=jnp.float32)
    h = jnp.maximum(h + b1_ref[...], 0.0)          # (1, hid) broadcasts over tile
    # fc2 (MXU) + bias.
    o = jnp.dot(h, w2_ref[...], preferred_element_type=jnp.float32)
    o_ref[...] = (o + b2_ref[...]).astype(o_ref.dtype)


def _round_up(n, m):
    return ((n + m - 1) // m) * m


def _cdiv(a, b):
    return -(-a // b)


@functools.partial(jax.jit, static_argnames=("image_shape", "batch_tile"))
def decoder_forward(x, w1, b1, w2, b2, image_shape, batch_tile=512):
    """x: (B, input_dim). w1:(in,hid), b1:(hid,), w2:(hid,out), b2:(out,).
    Returns (-1, *image_shape) like torch's x.view."""
    B, in_dim = x.shape
    hid = w1.shape[1]
    out_dim = w2.shape[1]
    itemsize = jnp.dtype(x.dtype).itemsize

    # --- batch tile selection (all values are static Python ints) -----------
    # tb must be a multiple of 8 (sublane rule); feature dims need no padding
    # because their blocks are full-extent; out_dim=256 is already lane-dense.
    b8 = _round_up(B, 8)
    tb_cap = max(8, _round_up(min(batch_tile, b8), 8))
    n_tiles = _cdiv(b8, tb_cap)
    # v7x dual-TC: if the whole batch fits one tile but splits into two equal
    # multiple-of-8 halves for free, use two grid steps so both cores work.
    if n_tiles == 1 and b8 >= 16 and b8 % 16 == 0:
        n_tiles = 2
    tb = _round_up(_cdiv(b8, n_tiles), 8)   # balanced tile, multiple of 8
    bp = tb * n_tiles                        # padded batch (>= B, pad <= tb)

    # Pad the batch only when necessary; padded rows compute relu(b1)@W2 + b2
    # and are sliced off below (keep that slice!).
    xp = x if bp == B else jnp.pad(x, ((0, bp - B), (0, 0)))
    b1r = b1.reshape(1, hid)
    b2r = b2.reshape(1, out_dim)

    # Real (unpadded) work: lets XLA schedule surrounding ops sensibly.
    flops = 2 * B * in_dim * hid + 2 * B * hid * out_dim
    bytes_accessed = itemsize * (
        B * in_dim + in_dim * hid + hid + hid * out_dim + out_dim + B * out_dim)
    cost = pl.CostEstimate(flops=flops, transcendentals=0,
                           bytes_accessed=bytes_accessed)

    flat = pl.pallas_call(
        decoder_kernel,
        out_shape=jax.ShapeDtypeStruct((bp, out_dim), x.dtype),
        grid_spec=pl.GridSpec(
            grid=(n_tiles,),
            in_specs=[
                # Streaming operand: one batch tile per grid step (pipelined).
                # Last dim == full in_dim -> full-extent, no lane padding needed.
                pl.BlockSpec((tb, in_dim), lambda i: (i, 0)),
                # Weights / biases: full-extent, constant block index ->
                # DMA'd once and VMEM-resident across all grid steps.
                pl.BlockSpec((in_dim, hid), lambda i: (0, 0)),
                pl.BlockSpec((1, hid), lambda i: (0, 0)),
                pl.BlockSpec((hid, out_dim), lambda i: (0, 0)),
                pl.BlockSpec((1, out_dim), lambda i: (0, 0)),
            ],
            out_specs=pl.BlockSpec((tb, out_dim), lambda i: (i, 0)),
        ),
        compiler_params=pltpu.CompilerParams(
            dimension_semantics=("parallel",)),
        cost_estimate=cost,
    )(xp, w1, b1r, w2, b2r)

    if bp != B:
        flat = flat[:B, :]
    # Equivalent of torch `x.view(-1, *image_shape)`.
    return flat.reshape((-1,) + tuple(image_shape))


def init_decoder_params(key, input_dim, hidden_dim, output_dim, dtype=jnp.float32):
    """Deterministic init mimicking nn.Linear default (uniform +/- 1/sqrt(fan_in)).
    Weights stored as (in, out) = PyTorch weight.T; biases 1-D."""
    k1, k2, k3, k4 = jax.random.split(key, 4)
    bound1 = 1.0 / (input_dim ** 0.5)
    bound2 = 1.0 / (hidden_dim ** 0.5)
    w1 = jax.random.uniform(k1, (input_dim, hidden_dim), dtype, -bound1, bound1)
    b1 = jax.random.uniform(k2, (hidden_dim,), dtype, -bound1, bound1)
    w2 = jax.random.uniform(k3, (hidden_dim, output_dim), dtype, -bound2, bound2)
    b2 = jax.random.uniform(k4, (output_dim,), dtype, -bound2, bound2)
    return w1, b1, w2, b2


if __name__ == "__main__":
    # Small shapes consistent with the module: image_shape=(1,16,16) -> output_dim=256
    batch = 8
    input_dim = 32
    hidden_dim = 64
    image_shape = (1, 16, 16)
    output_dim = 1 * 16 * 16

    key = jax.random.PRNGKey(0)
    kx, kp = jax.random.split(key)
    x = jax.random.normal(kx, (batch, input_dim), jnp.float32)
    w1, b1, w2, b2 = init_decoder_params(kp, input_dim, hidden_dim, output_dim)

    out = decoder_forward(x, w1, b1, w2, b2, image_shape)
    out = jax.block_until_ready(out)

    # Sanity check against a plain-JAX reference of the same math.
    ref = jnp.maximum(x @ w1 + b1[None, :], 0.0) @ w2 + b2[None, :]
    ref = ref.reshape((-1,) + image_shape)
    assert out.shape == (batch,) + image_shape, out.shape
    assert jnp.allclose(out, ref, atol=1e-4, rtol=1e-5), float(
        jnp.max(jnp.abs(out - ref)))

    # Exercise a batch that forces padding + >=2 grid steps (v7x dual-TC path).
    x2 = jax.random.normal(kx, (1000, input_dim), jnp.float32)
    out2 = jax.block_until_ready(decoder_forward(x2, w1, b1, w2, b2, image_shape))
    ref2 = (jnp.maximum(x2 @ w1 + b1[None, :], 0.0) @ w2 + b2[None, :]).reshape(
        (-1,) + image_shape)
    assert out2.shape == (1000,) + image_shape, out2.shape
    assert jnp.allclose(out2, ref2, atol=1e-4, rtol=1e-5), float(
        jnp.max(jnp.abs(out2 - ref2)))

    print("KERNEL_OK")
</pallas_src>

<mosaic_0001>
module attributes {stable_mosaic.version = 11 : i64} {
  func.func @decoder_kernel(%arg0: i32, %arg1: memref<8x32xf32, #tpu.memory_space<vmem>>, %arg2: memref<32x64xf32, #tpu.memory_space<vmem>>, %arg3: memref<1x64xf32, #tpu.memory_space<vmem>>, %arg4: memref<64x256xf32, #tpu.memory_space<vmem>>, %arg5: memref<1x256xf32, #tpu.memory_space<vmem>>, %arg6: memref<8x256xf32, #tpu.memory_space<vmem>>) attributes {dimension_semantics = [#tpu.dimension_semantics<parallel>], iteration_bounds = array<i64: 1>, scalar_prefetch = 0 : i64, scratch_operands = 0 : i64, tpu.core_type = #tpu.core_type<tc>, window_params = [{transform_indices = @transform_0, window_bounds = array<i64: 8, 32>}, {pipeline_mode = #tpu.pipeline_mode<synchronous>, transform_indices = @transform_1, window_bounds = array<i64: 32, 64>}, {pipeline_mode = #tpu.pipeline_mode<synchronous>, transform_indices = @transform_2, window_bounds = array<i64: 1, 64>}, {pipeline_mode = #tpu.pipeline_mode<synchronous>, transform_indices = @transform_3, window_bounds = array<i64: 64, 256>}, {pipeline_mode = #tpu.pipeline_mode<synchronous>, transform_indices = @transform_4, window_bounds = array<i64: 1, 256>}, {transform_indices = @transform_5, window_bounds = array<i64: 8, 256>}]} {
    %c0 = arith.constant 0 : index
    %c0_0 = arith.constant 0 : index
    %0 = vector.load %arg1[%c0, %c0_0] : memref<8x32xf32, #tpu.memory_space<vmem>>, vector<8x32xf32>
    %c0_1 = arith.constant 0 : index
    %c0_2 = arith.constant 0 : index
    %1 = vector.load %arg2[%c0_1, %c0_2] : memref<32x64xf32, #tpu.memory_space<vmem>>, vector<32x64xf32>
    %cst = arith.constant dense<0.000000e+00> : vector<8x64xf32>
    %2 = tpu.matmul %0, %1, %cst {dimension_numbers = #tpu.dot_dimension_numbers<[1], [0], [0], [1], [0, 0, 1, 1], [], []>} : vector<8x32xf32>, vector<32x64xf32>, vector<8x64xf32> -> vector<8x64xf32>
    %c0_3 = arith.constant 0 : index
    %c0_4 = arith.constant 0 : index
    %3 = vector.load %arg3[%c0_3, %c0_4] : memref<1x64xf32, #tpu.memory_space<vmem>>, vector<1x64xf32>
    %4 = vector.broadcast %3 : vector<1x64xf32> to vector<8x64xf32>
    %5 = arith.addf %2, %4 : vector<8x64xf32>
    %cst_5 = arith.constant 0.000000e+00 : f32
    %6 = vector.broadcast %cst_5 : f32 to vector<8x64xf32>
    %7 = arith.maximumf %5, %6 : vector<8x64xf32>
    %c0_6 = arith.constant 0 : index
    %c0_7 = arith.constant 0 : index
    %8 = vector.load %arg4[%c0_6, %c0_7] : memref<64x256xf32, #tpu.memory_space<vmem>>, vector<64x256xf32>
    %cst_8 = arith.constant dense<0.000000e+00> : vector<8x256xf32>
    %9 = tpu.matmul %7, %8, %cst_8 {dimension_numbers = #tpu.dot_dimension_numbers<[1], [0], [0], [1], [0, 0, 1, 1], [], []>} : vector<8x64xf32>, vector<64x256xf32>, vector<8x256xf32> -> vector<8x256xf32>
    %c0_9 = arith.constant 0 : index
    %c0_10 = arith.constant 0 : index
    %10 = vector.load %arg5[%c0_9, %c0_10] : memref<1x256xf32, #tpu.memory_space<vmem>>, vector<1x256xf32>
    %11 = vector.broadcast %10 : vector<1x256xf32> to vector<8x256xf32>
    %12 = arith.addf %9, %11 : vector<8x256xf32>
    %c0_11 = arith.constant 0 : index
    %c0_12 = arith.constant 0 : index
    %13 = vector.load %arg6[%c0_11, %c0_12] : memref<8x256xf32, #tpu.memory_space<vmem>>, vector<8x256xf32>
    tpu.vector_store %arg6[%c0_11, %c0_12], %12 {strides = array<i32>} : memref<8x256xf32, #tpu.memory_space<vmem>>, vector<8x256xf32>,
    return
  }
  func.func @transform_0(%arg0: i32) -> (i32, i32) {
    %c0_i32 = arith.constant 0 : i32
    %c0_i32_0 = arith.constant 0 : i32
    return %arg0, %c0_i32 : i32, i32
  }
  func.func @transform_1(%arg0: i32) -> (i32, i32) {
    %c0_i32 = arith.constant 0 : i32
    %c0_i32_0 = arith.constant 0 : i32
    %c0_i32_1 = arith.constant 0 : i32
    return %c0_i32, %c0_i32_0 : i32, i32
  }
  func.func @transform_2(%arg0: i32) -> (i32, i32) {
    %c0_i32 = arith.constant 0 : i32
    %c0_i32_0 = arith.constant 0 : i32
    %c0_i32_1 = arith.constant 0 : i32
    return %c0_i32, %c0_i32_0 : i32, i32
  }
  func.func @transform_3(%arg0: i32) -> (i32, i32) {
    %c0_i32 = arith.constant 0 : i32
    %c0_i32_0 = arith.constant 0 : i32
    %c0_i32_1 = arith.constant 0 : i32
    return %c0_i32, %c0_i32_0 : i32, i32
  }
  func.func @transform_4(%arg0: i32) -> (i32, i32) {
    %c0_i32 = arith.constant 0 : i32
    %c0_i32_0 = arith.constant 0 : i32
    %c0_i32_1 = arith.constant 0 : i32
    return %c0_i32, %c0_i32_0 : i32, i32
  }
  func.func @transform_5(%arg0: i32) -> (i32, i32) {
    %c0_i32 = arith.constant 0 : i32
    %c0_i32_0 = arith.constant 0 : i32
    return %arg0, %c0_i32 : i32, i32
  }
}

</mosaic_0001>

<bundles_post_ra>
// kernel: decoder_forward.1
= control target key start
LH: loop header
LB: loop body
LE: loop exit
PB: predicated region body
PF: predicated region fallthrough
CT: control target
= control target key end

     0   :  { %10 = vsyncpa [#allocation3], 0  ;;  %s466_s0 = inlined_call_operand.hbm [shape: f32[8,32], index: 0, kind: input, shape index: {}]   ;;  %s467_s1 = inlined_call_operand.hbm [shape: f32[32,64], index: 1, kind: input, shape index: {}]   ;;  %s468_s2 = inlined_call_operand.vmem [shape: f32[1,64], index: 2, kind: input, shape index: {}]   ;;  %s469_s3 = inlined_call_operand.hbm [shape: f32[64,256], index: 3, kind: input, shape index: {}]   ;;  %s470_s4 = inlined_call_operand.vmem [shape: f32[1,256], index: 4, kind: input, shape index: {}]   ;;  %s471_s5 = inlined_call_operand.vmem [shape: f32[8,256], index: 5, kind: output, shape index: {}]  }
   0x1   :  { %11 = vsyncpa [#allocation5], 0  ;;  %s378_s18 = smov [#allocation4]   ;;  %s308_s22 = scalar_lea.hbm %s467_s1, 512 }
   0x2   :  { %s27_s19 = sshll.u32 %s378_s18, 4  ;;  %p309_p0 = scmp.ne.s32.totalorder %s467_s1, %s308_s22  ;;  %s28_s19 = int_to_ptr.vmem [resolvable:$true] %s27_s19 }
   0x3   :  { %p312_p1 = scmp.lt.u32.totalorder %s308_s22, %s467_s1 }
   0x5   :  { %p314_p2 = pnand %p312_p1, %p309_p0 }
   0x7   :  { %317 = shalt.err (!%p314_p2)
}
   0x8   :  { %s318_s27 = scalar_lea.vmem %s28_s19, 512  ;;  %p323_p4 = scmp.lt.s32.totalorder %s28_s19, %s28_s19 }
   0x9   :  { %p319_p3 = scmp.ne.s32.totalorder %s28_s19, %s318_s27  ;;  %p324_p5 = scmp.lt.s32.totalorder %s318_s27, %s318_s27 }
   0xb   :  { %p325_p6 = por %p324_p5, %p323_p4 }
   0xd   :  { %p326_p7 = pnand %p325_p6, %p319_p3 }
   0xf   :  { %329 = shalt.err (!%p326_p7)
}
  0x10   :  { %s379_s28 = smov 128   ;;  %s380_s29 = smov 8  }
  0x11   :  { %33 = dma.hbm_to_vmem [thread:$0]  %s467_s1, 512, %s28_s19, [#allocation5], %s379_s28, %s379_s28, %s380_s29  }
  0x12   :  { %s381_s7 = smov [#allocation2]   ;;  %s382_s9 = smov [#allocation6]  }
  0x13   :  { %s18_s8 = sshll.u32 %s381_s7, 4  ;;  %s41_s10 = sshll.u32 %s382_s9, 4  ;;  %s19_s8 = int_to_ptr.vmem [resolvable:$true] %s18_s8  ;;  %s42_s10 = int_to_ptr.vmem [resolvable:$true] %s41_s10 }
  0x14   :  { %s330_s13 = scalar_lea.hbm %s466_s0, 128 }
  0x15   :  { %p331_p8 = scmp.ne.s32.totalorder %s466_s0, %s330_s13  ;;  %p334_p9 = scmp.lt.u32.totalorder %s330_s13, %s466_s0 }
  0x17   :  { %p336_p10 = pnand %p334_p9, %p331_p8 }
  0x19   :  { %339 = shalt.err (!%p336_p10)
}
  0x1a   :  { %s340_s1 = scalar_lea.vmem %s19_s8, 128  ;;  %p345_p12 = scmp.lt.s32.totalorder %s19_s8, %s19_s8 }
  0x1b   :  { %p341_p11 = scmp.ne.s32.totalorder %s19_s8, %s340_s1  ;;  %p346_p13 = scmp.lt.s32.totalorder %s340_s1, %s340_s1 }
  0x1d   :  { %p347_p0 = por %p346_p13, %p345_p12 }
  0x1f   :  { %p348_p1 = pnand %p347_p0, %p341_p11 }
  0x21   :  { %351 = shalt.err (!%p348_p1)
}
  0x22   :  { %21 = dma.hbm_to_vmem [thread:$0]  %s466_s0, 128, %s19_s8, [#allocation3]  }
  0x23   :  { %s352_s22 = scalar_lea.hbm %s469_s3, 2048 }
  0x24   :  { %p353_p2 = scmp.ne.s32.totalorder %s469_s3, %s352_s22  ;;  %p356_p3 = scmp.lt.u32.totalorder %s352_s22, %s469_s3 }
  0x26   :  { %p358_p4 = pnand %p356_p3, %p353_p2 }
  0x28   :  { %361 = shalt.err (!%p358_p4)
}
  0x29   :  { %s362_s27 = scalar_lea.vmem %s42_s10, 2048  ;;  %p367_p6 = scmp.lt.s32.totalorder %s42_s10, %s42_s10 }
  0x2a   :  { %p363_p5 = scmp.ne.s32.totalorder %s42_s10, %s362_s27  ;;  %p368_p7 = scmp.lt.s32.totalorder %s362_s27, %s362_s27 }
  0x2c   :  { %p369_p8 = por %p368_p7, %p367_p6 }
  0x2e   :  { %p370_p9 = pnand %p369_p8, %p363_p5 }
  0x30   :  { %373 = shalt.err (!%p370_p9)
}
  0x31   :  { %s383_s0 = smov 256   ;;  %s384_s28 = smov 16  }
  0x32   :  { %47 = dma.hbm_to_vmem [thread:$0]  %s469_s3, 2048, %s42_s10, [#allocation5], %s383_s0, %s383_s0, %s384_s28  }
  0x33   :  { %374 = dma.done.wait [#allocation3], 128  }
  0x34   :  { %375 = vsyncadd [#allocation3], 4294967168 }
  0x35   :  { %376 = dma.done.wait [#allocation5], 2560  }
  0x36   :  { %377 = vsyncadd [#allocation5], 4294964736  ;;  %v385_v0 = vmov 0.0|0.0   ;;  %vm386_vm0 = vmmov 0   ;;  %v387_v1 = vmov 0.0   ;;  %v60_v2 = vld [vmem:[#allocation4] sm:$0xff]  ;;  %v164_v38 = vlaneseq }
  0x37   :  { %276 = vmatprep.subr.bf16.mxu0 %v385_v0  ;;  %273 = vmatprep.mubr.msk.f32.mxu0 %vm386_vm0, %v387_v1  ;;  %v61_v3 = vld [vmem:[#allocation4 + $0x8] sm:$0xff]  ;;  %v62_v4 = vld [vmem:[#allocation4 + $0x10] sm:$0xff]  ;;  %v63_v6 = vld [vmem:[#allocation4 + $0x18] sm:$0xff]  ;;  %vm71_vm1 = vcmask 261120   ;;  %vm174_vm2 = vcmask 523264  }
  0x38   :  { %242 = vmatprep.mubr.f32.mxu1 %v387_v1  ;;  %v277_v5 = vpack.c.bf16 %v61_v3, %v60_v2  ;;  %v147_v7 = vld [vmem:[#allocation6 + $0x8] sm:$0xff]  ;;  %v149_v8 = vld [vmem:[#allocation6 + $0x18] sm:$0xff]  ;;  %v146_v9 = vld [vmem:[#allocation6] sm:$0xff]  ;;  %v280_v11 = vpack.c.bf16 %v63_v6, %v62_v4  ;;  %v165_v39 = vshrl.u32 %v164_v38, 7 }
  0x39   :  { %v148_v10 = vld [vmem:[#allocation6 + $0x10] sm:$0xff]  ;;  %v282_v12 = vpack.c.bf16 %v149_v8, %v147_v7  ;;  %v151_v14 = vld [vmem:[#allocation6 + $0x28] sm:$0xff]  ;;  %v153_v15 = vld [vmem:[#allocation6 + $0x38] sm:$0xff] }
  0x3a   :  { %278 = vmatpush3.bf16.msra.mxu0 %v277_v5  ;;  %v284_v13 = vpack.c.bf16 %v148_v10, %v146_v9  ;;  %v150_v16 = vld [vmem:[#allocation6 + $0x20] sm:$0xff]  ;;  %v286_v17 = vpack.c.bf16 %v153_v15, %v151_v14  ;;  %v152_v18 = vld [vmem:[#allocation6 + $0x30] sm:$0xff]  ;;  %v155_v19 = vld [vmem:[#allocation6 + $0x48] sm:$0xff]  ;;  %v166_v40 = vsub.s32 0, %v165_v39  ;;  %v170_v42 = vsub.s32 1, %v165_v39 }
  0x3b   :  { %279 = vmatprep.subr.bf16.mxu0 %v385_v0  ;;  %v157_v20 = vld [vmem:[#allocation6 + $0x58] sm:$0xff]  ;;  %283 = vmatprep.subr.bf16.mxu1 %v282_v12  ;;  %v288_v21 = vpack.c.bf16 %v152_v18, %v150_v16  ;;  %v154_v24 = vld [vmem:[#allocation6 + $0x40] sm:$0xff]  ;;  %v156_v25 = vld [vmem:[#allocation6 + $0x50] sm:$0xff] }
  0x3c   :  { %285 = vmatpush1.bf16.msra.mxu1 %v284_v13  ;;  %v59_v22 = vld [vmem:[#allocation2] sm:$0xff]  ;;  %v290_v23 = vpack.c.bf16 %v157_v20, %v155_v19  ;;  %v292_v26 = vpack.c.bf16 %v156_v25, %v154_v24  ;;  %v159_v27 = vld [vmem:[#allocation6 + $0x68] sm:$0xff]  ;;  %v158_v30 = vld [vmem:[#allocation6 + $0x60] sm:$0xff] }
  0x3d   :  { %287 = vmatprep.subr.bf16.mxu1 %v286_v17  ;;  %v161_v28 = vld [vmem:[#allocation6 + $0x78] sm:$0xff]  ;;  %v160_v31 = vld [vmem:[#allocation6 + $0x70] sm:$0xff] }
  0x3e   :  { %281 = vmatpush3.bf16.msra.mxu0 %v280_v11  ;;  %v294_v29 = vpack.c.bf16 %v161_v28, %v159_v27  ;;  %v296_v32 = vpack.c.bf16 %v160_v31, %v158_v30  ;;  %v257_v33 = vld [vmem:[%s468_s2] ss:$0 sm:$0xff] }
  0x3f   :  { %v162_v41 = vld [vmem:[%s470_s4] sm:$0x3] }
  0x40   :  { %289 = vmatpush1.bf16.msra.mxu1 %v288_v21  ;;  %v167_v43 = vrot.slane %v162_v41, %v166_v40  ;;  %v171_v44 = vrot.slane %v162_v41, %v170_v42 }
  0x41   :  { %274 = vmatmul.mubr.msk.f32.vlgmr.msra.gmra.mrb[0].mxu0 %vm71_vm1, %v59_v22  ;;  %291 = vmatprep.subr.bf16.mxu1 %v290_v23 }
  0x44   :  { %293 = vmatpush1.bf16.msra.mxu1 %v292_v26 }
  0x45   :  { %295 = vmatprep.subr.bf16.mxu1 %v294_v29 }
  0x48   :  { %297 = vmatpush1.bf16.msra.mxu1 %v296_v32 }
 0x114   :  { %v141_v34 = vpop.f32.mrb[0].mxu0 }
 0x115   :  { %v142_v35 = vadd.f32 %v257_v33, %v141_v34  ;;  %v275_v36 = vpop.f32.mrb[1].mxu0 }
 0x117   :  { %v145_v37 = vmax.f32 %v142_v35, 0.0 }
 0x119   :  { %259 = vmatmul.mubr.msk.f32.vlgmr.msra.gmra.mrb[0].mxu1 %vm174_vm2, %v145_v37 }
 0x1ec   :  { %v244_v45 = vpop.f32.mrb[0].mxu1 }
 0x1ed   :  { %v245_v46 = vadd.f32 %v244_v45, %v167_v43  ;;  %v246_v47 = vpop.f32.mrb[1].mxu1 }
 0x1ee   :  { %v247_v48 = vadd.f32 %v246_v47, %v171_v44 }
 0x1ef   :  { %249 = vst [vmem:[%s471_s5] sm:$0xff] %v245_v46 }
 0x1f0   :  { %250 = vst [vmem:[%s471_s5 + $0x8] sm:$0xff] %v247_v48 }
 0x1f1   :  { %255 = vsyncpa [#allocation3], 1 }
 0x1f2   :  { %256 = vsyncpa [#allocation5], 1 }

</bundles_post_ra>
